<compile_context>
chip_gen: v5e
topology: v5e:2x2
jax: 0.10.0
libtpu: 0.0.40
codegen_flags: <defaults>
</compile_context>

<pallas_src>
import jax
import jax.numpy as jnp
from jax.experimental import pallas as pl
from jax.experimental.pallas import tpu as pltpu

HIDDEN = 32     # hidden width of the synthetic inner network
LATENT = 8      # latent width of the synthetic inner network (folded away)
LANE_TILE = 256 # batch elements per grid step (multiple of 128 -> lane-dense)

# Column-slab layout (shape (HIDDEN, 8), f32):
#   col 0 : W_enc[0, :]                      (encoder weight acting on x)
#   col 1 : c_enc = p * W_enc[1, :] + b_enc  (x-independent encoder constant)
#   col 2 : b_md  = b_mu @ W_d1 + b_d1       (folded mu->dec1 bias)
#   col 3 : W_d2[:, 0]                       (decoder head, output 0)
#   col 4 : W_d2[:, 1]                       (decoder head, output 1)
#   col 5 : [b_d2[0], b_d2[1], p, 0, ...]    (scalars)
#   cols 6-7 : zero padding


def prediction_net_kernel(x_ref, cols_ref, w_md_t_ref, out_ref):
    x = x_ref[...]                               # (1, TB)  batch along lanes
    cols = cols_ref[...]                         # (H, 8)   single vector load

    w_x    = cols[:, 0:1]                        # (H, 1)
    c_enc  = cols[:, 1:2]                        # (H, 1)
    b_md   = cols[:, 2:3]                        # (H, 1)
    wd2_0  = cols[:, 3:4]                        # (H, 1)
    wd2_1  = cols[:, 4:5]                        # (H, 1)
    b_d2_0 = cols[0:1, 5:6]                      # (1, 1)
    b_d2_1 = cols[1:2, 5:6]                      # (1, 1)
    p      = cols[2:3, 5:6]                      # (1, 1)

    # encoder: h = tanh(W_enc @ [x, p] + b_enc); the p-term is folded into
    # c_enc, so this is a pure VPU broadcast-FMA (no K=2 MXU push).
    h = jnp.tanh(w_x * x + c_enc)                # (H, TB)

    # folded mu -> decoder-layer-1 (z = mu): d = tanh(W_md^T @ h + b_md)
    d = jnp.tanh(
        jnp.dot(w_md_t_ref[...], h, preferred_element_type=jnp.float32) + b_md
    )                                            # (H, TB)

    # decoder head (H -> 2) as two sublane reductions (XLU) instead of an
    # N=2 MXU matmul.
    xh0 = jnp.sum(d * wd2_0, axis=0, keepdims=True) + b_d2_0   # (1, TB)
    xh1 = jnp.sum(d * wd2_1, axis=0, keepdims=True) + b_d2_1   # (1, TB)

    # energy = (x - x_hat[0])**2 + (p - x_hat[1])**2   (per batch element)
    energy = (x - xh0) ** 2 + (p - xh1) ** 2                    # (1, TB)

    # combined lane-dense output slab: row 0 = energy, row 1 = x, row 2 = p
    out_ref[0:1, :] = energy
    out_ref[1:2, :] = x
    out_ref[2:3, :] = jnp.broadcast_to(p, x.shape)


def pack_params(params):
    """Fold + pack module parameters into (cols_slab (H,8), W_md^T (H,H))."""
    (w_in, b_in, w_enc, b_enc, w_mu, b_mu, w_d1, b_d1, w_d2, b_d2) = params
    f32 = jnp.float32

    # p = self.input(torch.ones(1)) — x-independent, computed once on the host.
    p = (w_in * 1.0 + b_in).reshape(()).astype(f32)

    w_md_t = (w_mu @ w_d1).T.astype(f32)                    # (H, H), transposed
    b_md = (b_mu @ w_d1 + b_d1).reshape(-1).astype(f32)     # (H,)
    c_enc = (p * w_enc[1, :] + b_enc.reshape(-1)).astype(f32)

    cols = jnp.zeros((HIDDEN, 8), f32)
    cols = cols.at[:, 0].set(w_enc[0, :].astype(f32))
    cols = cols.at[:, 1].set(c_enc)
    cols = cols.at[:, 2].set(b_md)
    cols = cols.at[:, 3].set(w_d2[:, 0].astype(f32))
    cols = cols.at[:, 4].set(w_d2[:, 1].astype(f32))
    cols = cols.at[0, 5].set(b_d2[0, 0].astype(f32))
    cols = cols.at[1, 5].set(b_d2[0, 1].astype(f32))
    cols = cols.at[2, 5].set(p)
    return cols, w_md_t


def prediction_net(x, params):
    """x: (B, 1) or (B,) float32 — batched sweep of scalar inputs.

    Returns (energy (B, 1), xp (B, 2)), matching PredictionNet.forward per row.
    """
    cols, w_md_t = pack_params(params)

    b = x.shape[0]
    n_blocks = max(1, -(-b // LANE_TILE))
    pad_b = n_blocks * LANE_TILE
    x_row = jnp.pad(
        x.reshape(1, -1).astype(jnp.float32), ((0, 0), (0, pad_b - b)))

    out = pl.pallas_call(
        prediction_net_kernel,
        out_shape=jax.ShapeDtypeStruct((3, pad_b), jnp.float32),
        grid_spec=pltpu.PrefetchScalarGridSpec(
            num_scalar_prefetch=0,
            grid=(n_blocks,),
            in_specs=[
                pl.BlockSpec((1, LANE_TILE), lambda i: (0, i)),       # x lanes
                pl.BlockSpec((HIDDEN, 8), lambda i: (0, 0)),          # packed slab
                pl.BlockSpec((HIDDEN, HIDDEN), lambda i: (0, 0)),     # W_md^T
            ],
            out_specs=pl.BlockSpec((3, LANE_TILE), lambda i: (0, i)),
        ),
        compiler_params=pltpu.CompilerParams(
            dimension_semantics=("parallel",)),
    )(x_row, cols, w_md_t)

    energy = out[0, :b].reshape(-1, 1)                     # (B, 1)
    xp = jnp.stack([out[1, :b], out[2, :b]], axis=-1)      # (B, 2) = [x, p]
    return energy, xp


def init_params(key):
    """Deterministic synthetic parameters (logvar branch dropped: unused)."""
    ks = jax.random.split(key, 10)
    f32 = jnp.float32

    def w(k, shape, scale):
        return (scale * jax.random.normal(k, shape)).astype(f32)

    w_in = w(ks[0], (1, 1), 0.5)
    b_in = w(ks[1], (1, 1), 0.1)
    w_enc = w(ks[2], (2, HIDDEN), 0.3)
    b_enc = w(ks[3], (1, HIDDEN), 0.05)
    w_mu = w(ks[4], (HIDDEN, LATENT), 0.2)
    b_mu = w(ks[5], (1, LATENT), 0.05)
    w_d1 = w(ks[6], (LATENT, HIDDEN), 0.3)
    b_d1 = w(ks[7], (1, HIDDEN), 0.05)
    w_d2 = w(ks[8], (HIDDEN, 2), 0.2)
    b_d2 = w(ks[9], (1, 2), 0.05)
    return (w_in, b_in, w_enc, b_enc, w_mu, b_mu, w_d1, b_d1, w_d2, b_d2)


if __name__ == "__main__":
    key = jax.random.PRNGKey(0)
    params = init_params(key)

    # The module is swept over xp = np.linspace(-1, 7, 300); do the whole sweep
    # as one batched pallas_call (lanes = individual scalar forward() calls).
    xs = jnp.linspace(-1.0, 7.0, 300, dtype=jnp.float32).reshape(-1, 1)

    energy, xp = prediction_net(xs, params)
    jax.block_until_ready((energy, xp))

    assert energy.shape == (300, 1) and xp.shape == (300, 2)
    assert jnp.isfinite(energy).all() and jnp.isfinite(xp).all()
    # xp = concat([x, p]): column 0 must be the input x, column 1 the constant p.
    assert jnp.allclose(xp[:, 0:1], xs, atol=1e-6)
    p_host = (params[0] * 1.0 + params[1]).reshape(())
    assert jnp.allclose(xp[:, 1], p_host, atol=1e-5)

    # Reference check of energy against a pure-JAX recompute of the same math.
    w_in, b_in, w_enc, b_enc, w_mu, b_mu, w_d1, b_d1, w_d2, b_d2 = params
    xp_ref = jnp.concatenate(
        [xs, jnp.full_like(xs, p_host)], axis=-1)               # (B, 2)
    h_ref = jnp.tanh(xp_ref @ w_enc + b_enc)
    z_ref = h_ref @ w_mu + b_mu                                  # z = mu
    d_ref = jnp.tanh(z_ref @ w_d1 + b_d1)
    xhat_ref = d_ref @ w_d2 + b_d2
    e_ref = (xs[:, 0] - xhat_ref[:, 0]) ** 2 + (p_host - xhat_ref[:, 1]) ** 2
    assert jnp.allclose(energy[:, 0], e_ref, atol=1e-4, rtol=1e-4)

    print("KERNEL_OK")
</pallas_src>

<mosaic_0001>
module attributes {stable_mosaic.version = 11 : i64} {
  func.func @prediction_net_kernel(%arg0: i32, %arg1: memref<1x256xf32, #tpu.memory_space<vmem>>, %arg2: memref<32x8xf32, #tpu.memory_space<vmem>>, %arg3: memref<32x32xf32, #tpu.memory_space<vmem>>, %arg4: memref<3x256xf32, #tpu.memory_space<vmem>>) attributes {dimension_semantics = [#tpu.dimension_semantics<parallel>], iteration_bounds = array<i64: 2>, scalar_prefetch = 0 : i64, scratch_operands = 0 : i64, tpu.core_type = #tpu.core_type<tc>, window_params = [{transform_indices = @transform_0, window_bounds = array<i64: 1, 256>}, {pipeline_mode = #tpu.pipeline_mode<synchronous>, transform_indices = @transform_1, window_bounds = array<i64: 32, 8>}, {pipeline_mode = #tpu.pipeline_mode<synchronous>, transform_indices = @transform_2, window_bounds = array<i64: 32, 32>}, {transform_indices = @transform_3, window_bounds = array<i64: 3, 256>}]} {
    %c0 = arith.constant 0 : index
    %c0_0 = arith.constant 0 : index
    %0 = vector.load %arg1[%c0, %c0_0] : memref<1x256xf32, #tpu.memory_space<vmem>>, vector<1x256xf32>
    %c0_1 = arith.constant 0 : index
    %c0_2 = arith.constant 0 : index
    %1 = vector.load %arg2[%c0_1, %c0_2] : memref<32x8xf32, #tpu.memory_space<vmem>>, vector<32x8xf32>
    %2 = vector.extract_strided_slice %1 {offsets = [0, 0], sizes = [32, 1], strides = [1, 1]} : vector<32x8xf32> to vector<32x1xf32>
    %3 = vector.extract_strided_slice %1 {offsets = [0, 1], sizes = [32, 1], strides = [1, 1]} : vector<32x8xf32> to vector<32x1xf32>
    %4 = vector.extract_strided_slice %1 {offsets = [0, 2], sizes = [32, 1], strides = [1, 1]} : vector<32x8xf32> to vector<32x1xf32>
    %5 = vector.extract_strided_slice %1 {offsets = [0, 3], sizes = [32, 1], strides = [1, 1]} : vector<32x8xf32> to vector<32x1xf32>
    %6 = vector.extract_strided_slice %1 {offsets = [0, 4], sizes = [32, 1], strides = [1, 1]} : vector<32x8xf32> to vector<32x1xf32>
    %7 = vector.extract_strided_slice %1 {offsets = [0, 5], sizes = [1, 1], strides = [1, 1]} : vector<32x8xf32> to vector<1x1xf32>
    %8 = vector.extract_strided_slice %1 {offsets = [1, 5], sizes = [1, 1], strides = [1, 1]} : vector<32x8xf32> to vector<1x1xf32>
    %9 = vector.extract_strided_slice %1 {offsets = [2, 5], sizes = [1, 1], strides = [1, 1]} : vector<32x8xf32> to vector<1x1xf32>
    %10 = vector.broadcast %2 : vector<32x1xf32> to vector<32x256xf32>
    %11 = vector.broadcast %0 : vector<1x256xf32> to vector<32x256xf32>
    %12 = arith.mulf %10, %11 : vector<32x256xf32>
    %13 = vector.broadcast %3 : vector<32x1xf32> to vector<32x256xf32>
    %14 = arith.addf %12, %13 : vector<32x256xf32>
    %15 = math.tanh %14 : vector<32x256xf32>
    %c0_3 = arith.constant 0 : index
    %c0_4 = arith.constant 0 : index
    %16 = vector.load %arg3[%c0_3, %c0_4] : memref<32x32xf32, #tpu.memory_space<vmem>>, vector<32x32xf32>
    %cst = arith.constant dense<0.000000e+00> : vector<32x256xf32>
    %17 = tpu.matmul %16, %15, %cst {dimension_numbers = #tpu.dot_dimension_numbers<[1], [0], [0], [1], [0, 0, 1, 1], [], []>} : vector<32x32xf32>, vector<32x256xf32>, vector<32x256xf32> -> vector<32x256xf32>
    %18 = vector.broadcast %4 : vector<32x1xf32> to vector<32x256xf32>
    %19 = arith.addf %17, %18 : vector<32x256xf32>
    %20 = math.tanh %19 : vector<32x256xf32>
    %21 = vector.broadcast %5 : vector<32x1xf32> to vector<32x256xf32>
    %22 = arith.mulf %20, %21 : vector<32x256xf32>
    %cst_5 = arith.constant dense<0.000000e+00> : vector<256xf32>
    %23 = vector.multi_reduction <add>, %22, %cst_5 [0] : vector<32x256xf32> to vector<256xf32>
    %24 = vector.shape_cast %23 : vector<256xf32> to vector<1x256xf32>
    %25 = vector.broadcast %7 : vector<1x1xf32> to vector<1x256xf32>
    %26 = arith.addf %24, %25 : vector<1x256xf32>
    %27 = vector.broadcast %6 : vector<32x1xf32> to vector<32x256xf32>
    %28 = arith.mulf %20, %27 : vector<32x256xf32>
    %cst_6 = arith.constant dense<0.000000e+00> : vector<256xf32>
    %29 = vector.multi_reduction <add>, %28, %cst_6 [0] : vector<32x256xf32> to vector<256xf32>
    %30 = vector.shape_cast %29 : vector<256xf32> to vector<1x256xf32>
    %31 = vector.broadcast %8 : vector<1x1xf32> to vector<1x256xf32>
    %32 = arith.addf %30, %31 : vector<1x256xf32>
    %33 = arith.subf %0, %26 : vector<1x256xf32>
    %34 = arith.mulf %33, %33 : vector<1x256xf32>
    %35 = vector.broadcast %9 : vector<1x1xf32> to vector<1x256xf32>
    %36 = arith.subf %35, %32 : vector<1x256xf32>
    %37 = arith.mulf %36, %36 : vector<1x256xf32>
    %38 = arith.addf %34, %37 : vector<1x256xf32>
    %c0_7 = arith.constant 0 : index
    %c0_8 = arith.constant 0 : index
    %39 = vector.load %arg4[%c0_7, %c0_8] : memref<3x256xf32, #tpu.memory_space<vmem>>, vector<1x256xf32>
    tpu.vector_store %arg4[%c0_7, %c0_8], %38 {strides = array<i32>} : memref<3x256xf32, #tpu.memory_space<vmem>>, vector<1x256xf32>,
    %c1 = arith.constant 1 : index
    %c0_9 = arith.constant 0 : index
    %40 = vector.load %arg4[%c1, %c0_9] : memref<3x256xf32, #tpu.memory_space<vmem>>, vector<1x256xf32>
    tpu.vector_store %arg4[%c1, %c0_9], %0 {strides = array<i32>} : memref<3x256xf32, #tpu.memory_space<vmem>>, vector<1x256xf32>,
    %41 = vector.shape_cast %9 : vector<1x1xf32> to vector<1x1xf32>
    %42 = vector.broadcast %41 : vector<1x1xf32> to vector<1x256xf32>
    %c2 = arith.constant 2 : index
    %c0_10 = arith.constant 0 : index
    %43 = vector.load %arg4[%c2, %c0_10] : memref<3x256xf32, #tpu.memory_space<vmem>>, vector<1x256xf32>
    tpu.vector_store %arg4[%c2, %c0_10], %42 {strides = array<i32>} : memref<3x256xf32, #tpu.memory_space<vmem>>, vector<1x256xf32>,
    return
  }
  func.func @transform_0(%arg0: i32) -> (i32, i32) {
    %c0_i32 = arith.constant 0 : i32
    %c0_i32_0 = arith.constant 0 : i32
    return %c0_i32, %arg0 : i32, i32
  }
  func.func @transform_1(%arg0: i32) -> (i32, i32) {
    %c0_i32 = arith.constant 0 : i32
    %c0_i32_0 = arith.constant 0 : i32
    %c0_i32_1 = arith.constant 0 : i32
    return %c0_i32, %c0_i32_0 : i32, i32
  }
  func.func @transform_2(%arg0: i32) -> (i32, i32) {
    %c0_i32 = arith.constant 0 : i32
    %c0_i32_0 = arith.constant 0 : i32
    %c0_i32_1 = arith.constant 0 : i32
    return %c0_i32, %c0_i32_0 : i32, i32
  }
  func.func @transform_3(%arg0: i32) -> (i32, i32) {
    %c0_i32 = arith.constant 0 : i32
    %c0_i32_0 = arith.constant 0 : i32
    return %c0_i32, %arg0 : i32, i32
  }
}

</mosaic_0001>

<bundles_post_ra>
// kernel: tpu_custom_call.1
= control target key start
LH: loop header
LB: loop body
LE: loop exit
PB: predicated region body
PF: predicated region fallthrough
CT: control target
= control target key end

     0   :  { %8 = vsyncpa [#allocation3], 0  ;;  %s938_s0 = inlined_call_operand.vmem [shape: f32[1,512], index: 0, kind: input, shape index: {}]   ;;  %s939_s1 = inlined_call_operand.vmem [shape: f32[32,8], index: 1, kind: input, shape index: {}]   ;;  %s940_s2 = inlined_call_operand.vmem [shape: f32[32,32], index: 2, kind: input, shape index: {}]   ;;  %s941_s3 = inlined_call_operand.hbm [shape: f32[3,512], index: 3, kind: output, shape index: {}]  }
   0x1   :  { %10 = vsyncpa [#allocation3 + $0x1], 0  ;;  %s754_s12 = smov 0   ;;  %s756_s13 = smov 0  }
   0x2   :  { %s758_s14 = smov 0   ;;  %s760_s15 = smov 0  }
   0x3 LB: > { %s775_s16 = sadd.s32 4294967295, %s726_s15   ;;  %s540_s17 = sadd.s32 4294967294, %s726_s15   ;;  %s726_s15 = sphi %s760_s15, %s949_s15   ;;  %s722_s14 = sphi %s758_s14, %s948_s14   ;;  %s718_s13 = sphi %s756_s13, %s947_s13   ;;  %s714_s12 = sphi %s754_s12, %s946_s12  }
   0x4   : > { %s779_s18 = sadd.s32 1, %s726_s15   ;;  %s91_s19 = sadd.s32 1, %s722_s14 }
   0x5   : > { %s88_s20 = ssub.s32 %s726_s15, %s779_s18  ;;  %p101_p0 = scmp.ne.s32.totalorder %s722_s14, %s718_s13 }
   0x6   : > { %p89_p1 = scmp.eq.s32.totalorder %s88_s20, 0  ;;  %p102_p2 = scmp.eq.s32.totalorder %s775_s16, 1 }
   0x7   : > { %p107_p3 = scmp.ne.s32.totalorder %s718_s13, %s714_s12  ;;  %p108_p4 = scmp.eq.s32.totalorder %s540_s17, 1 }
   0x8   : > { %s790_s21 = scalar_select %p89_p1, %s722_s14, %s91_s19  }
   0x9   : > { %p792_p5 = por %p102_p2, %p101_p0  ;;  %p796_p6 = por %p108_p4, %p107_p3 }
   0xa   : > { %p543_p7 = scmp.ge.s32.totalorder %s726_s15, 1  ;;  %p140_p8 = scmp.lt.s32.totalorder %s726_s15, 3 }
   0xc   : > { %p141_p9 = pnand %p543_p7, %p140_p8 }
   0xd   : > { %s545_s5 = sshll.u32 (!%p141_p9), %s775_s16, 1  ;;  %s160_s26 = sand.u32 (!%p141_p9), 1, %s718_s13  }
   0xe   : > { %144 = sbr.rel (%p141_p9) target bundleno = 353 (0x161), region = 32  ;;  %p164_p10 = scmp.lt.s32.totalorder (!%p141_p9), %s545_s5, 3 }
   0xf   : > { %s544_s27 = sshll.u32 (!%p141_p9), %s160_s26, 3  ;;  %s561_s29 = sshll.u32 (!%p141_p9), %s775_s16, 3 }
  0x10   : > { %s883_s28 = scalar_lea.vmem (!%p141_p9), [#allocation2], %s544_s27  ;;  %s468_s16 = scalar_lea.sflag (!%p141_p9), [#allocation3], %s160_s26 }
  0x11   : > { %s481_s6 = sshll.u32 (!%p141_p9), %s883_s28, 4  ;;  %s684_s17 = scalar_lea.hbm (!%p141_p9), %s941_s3, 16  ;;  %s482_s6 = int_to_ptr.vmem [resolvable:$true] %s481_s6 }
  0x13   : > { %v805_v0 = vld [vmem:[%s939_s1 + $0x18] sm:$0xff]  ;;  %v728_v1 = vmov 0   ;;  %v729_v2 = vmov 1   ;;  %v812_v3 = vld [vmem:[%s939_s1 + $0x10] sm:$0xff]  ;;  %v818_v4 = vld [vmem:[%s939_s1 + $0x8] sm:$0xff]  ;;  %s951_s5 = smov (!%p164_p10, %s545_s5), 3 }
  0x14   : > { %615 = vset.pattern.permute.xlu0 %v728_v1  ;;  %616 = vset.pattern.permute.xlu1 %v729_v2  ;;  %v825_v5 = vld [vmem:[%s939_s1] sm:$0xff]  ;;  %s166_s8 = scalar_lea.vmem %s938_s0, %s951_s5  ;;  %v730_v9 = vmov 2   ;;  %v731_v17 = vmov 4   ;;  %v732_v22 = vmov 3   ;;  %vm259_vm0 = vcmask 261120   ;;  %v241_v44 = vld [vmem:[%s940_s2 + $0x10] sm:$0xff]  ;;  %s479_s5 = scalar_lea.hbm %s941_s3, %s561_s29 }
  0x15   : > { %191 = vperm.xlu0 %615, %v805_v0   ;;  %220 = vperm.xlu1 %616, %v805_v0   ;;  %v834_v6 = vld [vmem:[%s166_s8] sm:$0x3]  ;;  %v240_v46 = vld [vmem:[%s940_s2 + $0x8] sm:$0xff]  ;;  %v242_v47 = vld [vmem:[%s940_s2 + $0x18] sm:$0xff]  ;;  %v733_v48 = vmov 5   ;;  %vm433_vm2 = vcmask 1040384  }
  0x16   : > { %618 = vset.pattern.permute.xlu2 %v729_v2  ;;  %v195_v7 = vperm.slane %v834_v6, 0  ;;  %v196_v8 = vperm.slane %v834_v6, 1  ;;  %v239_v43 = vld [vmem:[%s940_s2] sm:$0xff]  ;;  %s483_s7 = sshll.u32 %s479_s5, 4  ;;  %s484_s7 = int_to_ptr.hbm [resolvable:$true] %s483_s7 }
  0x17   : > { %216 = vperm.xlu2 %618, %v812_v3   ;;  %s678_s8 = sshra.s32 %s484_s7, 4  ;;  %s679_s8 = int_to_ptr.hbm [resolvable:$true] %s678_s8 }
  0x18   : > { %s680_s9 = scalar_lea.hbm %s679_s8, 8  ;;  %p685_p0 = scmp.lt.s32.totalorder %s679_s8, %s941_s3 }
  0x19   : > { %p681_p11 = scmp.ne.s32.totalorder %s679_s8, %s680_s9  ;;  %p686_p1 = scmp.lt.s32.totalorder %s684_s17, %s680_s9 }
  0x1b   : > { %p682_p12 = pnand %p681_p11, %p792_p5  ;;  %p687_p2 = por %p686_p1, %p685_p0 }
  0x1d   : > { %186 = vperm.xlu0 %615, %v812_v3   ;;  %617 = vset.pattern.permute.xlu1 %v728_v1  ;;  %p683_p13 = pneg %p682_p12 }
  0x1e   : > { %181 = vperm.xlu1 %617, %v818_v4  }
  0x1f   : > { %619 = vset.pattern.permute.xlu2 %v728_v1  ;;  %p688_p3 = pnand %p687_p2, %p683_p13 }
  0x20   : > { %176 = vperm.xlu2 %619, %v825_v5  }
  0x25   : > { %620 = vset.pattern.permute.xlu0 %v729_v2 }
  0x26   : > { %212 = vperm.xlu0 %620, %v818_v4   ;;  %621 = vset.pattern.permute.xlu1 %v729_v2  ;;  %v456_v2 = vlaneseq }
  0x27   : > { %208 = vperm.xlu1 %621, %v825_v5  }
  0x28   : > { %622 = vset.pattern.permute.xlu2 %v730_v9  ;;  %vm879_vm1 = vcmp.lt.s32.totalorder %v456_v2, 256 }
  0x29   : > { %244 = vperm.xlu2 %622, %v825_v5   ;;  %554 = vst.msk [vmem:[%s883_s28 + $0x1] ss:$4 sm:$0x3] %vm879_vm1, %v834_v6 }
  0x2e   : > { %624 = vset.pattern.permute.xlu0 %v730_v9 }
  0x2f   : > { %623 = vset.pattern.permute.xlu1 %v730_v9  ;;  %256 = vperm.xlu0 %624, %v805_v0  }
  0x30   : > { %248 = vperm.xlu1 %623, %v818_v4  }
  0x31   : > { %252 = vperm.xlu2 %622, %v812_v3  }
  0x37   : > { %627 = vset.pattern.permute.xlu0 %v732_v22 }
  0x38   : > { %625 = vset.pattern.permute.xlu1 %v731_v17  ;;  %339 = vperm.xlu0 %627, %v825_v5  }
  0x39   : > { %387 = vperm.xlu1 %625, %v825_v5   ;;  %626 = vset.pattern.permute.xlu2 %v731_v17 }
  0x3a   : > { %391 = vperm.xlu2 %626, %v818_v4  }
  0x40   : > { %631 = vset.pattern.permute.xlu0 %v731_v17 }
  0x41   : > { %395 = vperm.xlu1 %625, %v812_v3  }
  0x42   : > { %399 = vperm.xlu2 %626, %v805_v0  }
  0x49   : > { %628 = vset.pattern.permute.xlu1 %v732_v22 }
  0x4a   : > { %343 = vperm.xlu1 %628, %v818_v4   ;;  %629 = vset.pattern.permute.xlu2 %v732_v22 }
  0x4b   : > { %347 = vperm.xlu2 %629, %v812_v3  }
  0x52   : > { %351 = vperm.xlu1 %628, %v805_v0  }
  0x53   : > { %630 = vset.pattern.permute.xlu2 %v733_v48 }
  0x54   : > { %381 = vperm.xlu2 %630, %v825_v5  }
  0x71   : > { %v217_v14 = vpop.permute.xlu2 %216 }
  0x7a   : > { %v177_v27 = vpop.permute.xlu2 %176 }
  0x7b   : > { %v199_v28 = vmul.f32 %v195_v7, %v177_v27  ;;  %v200_v29 = vmul.f32 %v196_v8, %v177_v27 }
  0x83   : > { %v245_v49 = vpop.permute.xlu2 %244 }
  0x87   : > { %v192_v10 = vpop.permute.xlu0 %191  ;;  %v221_v11 = vpop.permute.xlu1 %220 }
  0x88   : > { %v205_v12 = vmul.f32 %v195_v7, %v192_v10  ;;  %v206_v13 = vmul.f32 %v196_v8, %v192_v10 }
  0x8a   : > { %v229_v15 = vadd.f32 %v221_v11, %v205_v12  ;;  %v230_v16 = vadd.f32 %v221_v11, %v206_v13 }
  0x8b   : > { %v253_v50 = vpop.permute.xlu2 %252 }
  0x8c   : > { %632 = vtanh.f32 %v229_v15 }
  0x8d   : > { %634 = vtanh.f32 %v230_v16 }
  0x8f   : > { %v187_v18 = vpop.permute.xlu0 %186 }
  0x90   : > { %v203_v19 = vmul.f32 %v195_v7, %v187_v18  ;;  %v204_v20 = vmul.f32 %v196_v8, %v187_v18  ;;  %v182_v21 = vpop.permute.xlu1 %181 }
  0x91   : > { %v201_v30 = vmul.f32 %v195_v7, %v182_v21  ;;  %v202_v31 = vmul.f32 %v196_v8, %v182_v21 }
  0x92   : > { %v633_v23 = vpop.eup %632  ;;  %v227_v24 = vadd.f32 %v217_v14, %v203_v19  ;;  %v228_v25 = vadd.f32 %v217_v14, %v204_v20 }
  0x93   : > { %v635_v26 = vpop.eup %634  ;;  %284 = vmatpush.msra.mxu0 %v633_v23  ;;  %562 = vmatpush.msra.mxu2 %v633_v23 }
  0x94   : > { %636 = vtanh.f32 %v227_v24  ;;  %313 = vmatpush.msra.mxu1 %v635_v26  ;;  %566 = vmatpush.msra.mxu3 %v635_v26  ;;  %v392_v51 = vpop.permute.xlu2 %391 }
  0x95   : > { %638 = vtanh.f32 %v228_v25 }
  0x98   : > { %v213_v32 = vpop.permute.xlu0 %212 }
  0x99   : > { %v225_v33 = vadd.f32 %v213_v32, %v201_v30  ;;  %v226_v34 = vadd.f32 %v213_v32, %v202_v31  ;;  %v209_v35 = vpop.permute.xlu1 %208 }
  0x9a   : > { %v637_v36 = vpop.eup %636  ;;  %v223_v37 = vadd.f32 %v209_v35, %v199_v28  ;;  %v224_v38 = vadd.f32 %v209_v35, %v200_v29 }
  0x9b   : > { %v639_v39 = vpop.eup %638  ;;  %640 = vtanh.f32 %v225_v33  ;;  %285 = vmatpush.msra.mxu0 %v637_v36  ;;  %563 = vmatpush.msra.mxu2 %v637_v36 }
  0x9c   : > { %642 = vtanh.f32 %v226_v34  ;;  %314 = vmatpush.msra.mxu1 %v639_v39  ;;  %567 = vmatpush.msra.mxu3 %v639_v39  ;;  %v871_v53 = vpop.permute.xlu2 %399 }
  0x9d   : > { %644 = vtanh.f32 %v223_v37 }
  0x9e   : > { %646 = vtanh.f32 %v224_v38 }
  0xa1   : > { %v641_v40 = vpop.eup %640  ;;  %v257_v60 = vpop.permute.xlu0 %256 }
  0xa2   : > { %v643_v41 = vpop.eup %642  ;;  %286 = vmatpush.msra.mxu0 %v641_v40  ;;  %564 = vmatpush.msra.mxu2 %v641_v40  ;;  %v249_v52 = vpop.permute.xlu1 %248 }
  0xa3   : > { %v645_v42 = vpop.eup %644  ;;  %315 = vmatpush.msra.mxu1 %v643_v41  ;;  %568 = vmatpush.msra.mxu3 %v643_v41 }
  0xa4   : > { %v647_v45 = vpop.eup %646  ;;  %287 = vmatpush.msra.mxu0 %v645_v42  ;;  %565 = vmatpush.msra.mxu2 %v645_v42 }
  0xa5   : > { %316 = vmatpush.msra.mxu1 %v647_v45  ;;  %569 = vmatpush.msra.mxu3 %v647_v45  ;;  %v348_v55 = vpop.permute.xlu2 %347 }
  0xa6   : > { %546 = vmatmul.msk.f32.vlgmr.msra.gmra.mxu0 %vm259_vm0, %v239_v43  ;;  %548 = vmatmul.msk.f32.vlgmr.msra.gmra.mxu2 %vm259_vm0, %v241_v44 }
  0xa7   : > { %550 = vmatmul.msk.f32.vlgmr.msra.gmra.mxu1 %vm259_vm0, %v239_v43  ;;  %552 = vmatmul.msk.f32.vlgmr.msra.gmra.mxu3 %vm259_vm0, %v241_v44 }
  0xaa   : > { %v340_v14 = vpop.permute.xlu0 %339 }
  0xab   : > { %v388_v54 = vpop.permute.xlu1 %387 }
  0xae   : > { %547 = vmatmul.msk.f32.gmra.mxu0 %vm259_vm0, %v240_v46  ;;  %549 = vmatmul.msk.f32.gmra.mxu2 %vm259_vm0, %v242_v47  ;;  %v874_v0 = vpop.permute.xlu2 %381 }
  0xaf   : > { %551 = vmatmul.msk.f32.gmra.mxu1 %vm259_vm0, %v240_v46  ;;  %553 = vmatmul.msk.f32.gmra.mxu3 %vm259_vm0, %v242_v47  ;;  %v463_v7 = vperm.slane %v874_v0, 2 }
  0xb1   : > { %555 = vst.msk [vmem:[%s883_s28 + $0x2] ss:$4 sm:$0x3] %vm879_vm1, %v463_v7 }
  0xb3   : > { %v396_v58 = vpop.permute.xlu1 %395 }
  0xbc   : > { %v344_v10 = vpop.permute.xlu1 %343 }
  0xc4   : > { %v352_v35 = vpop.permute.xlu1 %351 }
 0x123   : > { %v289_v56 = vpop.f32.mrf.mxu0 }
 0x124   : > { %v318_v57 = vpop.f32.mrf.mxu1  ;;  %v290_v59 = vadd.f32 %v289_v56, %v245_v49 }
 0x125   : > { %v319_v61 = vadd.f32 %v318_v57, %v245_v49 }
 0x126   : > { %648 = vtanh.f32 %v290_v59 }
 0x127   : > { %650 = vtanh.f32 %v319_v61 }
 0x129   : > { %v295_v62 = vpop.f32.mrf.mxu2 }
 0x12a   : > { %v324_v63 = vpop.f32.mrf.mxu3  ;;  %v296_v3 = vadd.f32 %v295_v62, %v253_v50 }
 0x12b   : > { %v292_v1 = vpop.f32.mrf.mxu0  ;;  %v325_v8 = vadd.f32 %v324_v63, %v253_v50 }
 0x12c   : > { %v293_v4 = vadd.f32 %v292_v1, %v249_v52  ;;  %v321_v5 = vpop.f32.mrf.mxu1  ;;  %v649_v12 = vpop.eup %648 }
 0x12d   : > { %v322_v9 = vadd.f32 %v321_v5, %v249_v52  ;;  %v651_v17 = vpop.eup %650  ;;  %v402_v20 = vmul.f32 %v649_v12, %v388_v54  ;;  %v354_v23 = vmul.f32 %v649_v12, %v340_v14 }
 0x12e   : > { %652 = vtanh.f32 %v293_v4  ;;  %v403_v26 = vmul.f32 %v651_v17, %v388_v54  ;;  %v355_v28 = vmul.f32 %v651_v17, %v340_v14 }
 0x12f   : > { %654 = vtanh.f32 %v322_v9 }
 0x130   : > { %656 = vtanh.f32 %v296_v3 }
 0x131   : > { %658 = vtanh.f32 %v325_v8  ;;  %v298_v13 = vpop.f32.mrf.mxu2 }
 0x132   : > { %v299_v15 = vadd.f32 %v298_v13, %v257_v60  ;;  %v327_v16 = vpop.f32.mrf.mxu3 }
 0x133   : > { %v328_v18 = vadd.f32 %v327_v16, %v257_v60 }
 0x134   : > { %v653_v19 = vpop.eup %652  ;;  %660 = vtanh.f32 %v299_v15 }
 0x135   : > { %v655_v21 = vpop.eup %654  ;;  %v404_v22 = vmul.f32 %v653_v19, %v392_v51  ;;  %v356_v24 = vmul.f32 %v653_v19, %v344_v10  ;;  %662 = vtanh.f32 %v328_v18 }
 0x136   : > { %v657_v25 = vpop.eup %656  ;;  %v405_v27 = vmul.f32 %v655_v21, %v392_v51  ;;  %v357_v29 = vmul.f32 %v655_v21, %v344_v10 }
 0x137   : > { %v659_v30 = vpop.eup %658  ;;  %v410_v31 = vadd.f32 %v404_v22, %v402_v20  ;;  %v362_v32 = vadd.f32 %v356_v24, %v354_v23  ;;  %v406_v36 = vmul.f32 %v657_v25, %v396_v58  ;;  %v358_v37 = vmul.f32 %v657_v25, %v348_v55 }
 0x138   : > { %v419_v33 = vadd.f32 %v405_v27, %v403_v26  ;;  %v371_v34 = vadd.f32 %v357_v29, %v355_v28  ;;  %v407_v39 = vmul.f32 %v659_v30, %v396_v58  ;;  %v359_v40 = vmul.f32 %v659_v30, %v348_v55 }
 0x139   : > { %v411_v43 = vadd.f32 %v410_v31, %v406_v36  ;;  %v363_v44 = vadd.f32 %v362_v32, %v358_v37 }
 0x13a   : > { %v661_v38 = vpop.eup %660  ;;  %v420_v47 = vadd.f32 %v419_v33, %v407_v39  ;;  %v372_v48 = vadd.f32 %v371_v34, %v359_v40 }
 0x13b   : > { %v663_v41 = vpop.eup %662  ;;  %v408_v42 = vmul.f32 %v661_v38, %v871_v53  ;;  %v360_v45 = vmul.f32 %v661_v38, %v352_v35 }
 0x13c   : > { %v409_v46 = vmul.f32 %v663_v41, %v871_v53  ;;  %v361_v49 = vmul.f32 %v663_v41, %v352_v35 }
 0x13d   : > { %v412_v50 = vadd.f32 %v411_v43, %v408_v42  ;;  %v364_v51 = vadd.f32 %v363_v44, %v360_v45 }
 0x13e   : > { %v421_v52 = vadd.f32 %v420_v47, %v409_v46  ;;  %v373_v54 = vadd.f32 %v372_v48, %v361_v49 }
 0x13f   : > { %v413_v56 = vrot.slane %v412_v50, 4  ;;  %v365_v57 = vrot.slane %v364_v51, 4 }
 0x140   : > { %v422_v59 = vrot.slane %v421_v52, 4  ;;  %v374_v58 = vrot.slane %v373_v54, 4 }
 0x141   : > { %v414_v55 = vadd.f32 %v413_v56, %v412_v50  ;;  %v366_v60 = vadd.f32 %v365_v57, %v364_v51 }
 0x142   : > { %v423_v61 = vadd.f32 %v422_v59, %v421_v52  ;;  %v375_v62 = vadd.f32 %v374_v58, %v373_v54 }
 0x143   : > { %v415_v63 = vrot.slane %v414_v55, 2  ;;  %v367_v1 = vrot.slane %v366_v60, 2 }
 0x144   : > { %v424_v2 = vrot.slane %v423_v61, 2  ;;  %v376_v3 = vrot.slane %v375_v62, 2 }
 0x145   : > { %v416_v53 = vadd.f32 %v415_v63, %v414_v55  ;;  %v368_v4 = vadd.f32 %v367_v1, %v366_v60 }
 0x146   : > { %v425_v5 = vadd.f32 %v424_v2, %v423_v61  ;;  %v377_v7 = vadd.f32 %v376_v3, %v375_v62 }
 0x147   : > { %v417_v8 = vrot.slane %v416_v53, 1  ;;  %v369_v12 = vrot.slane %v368_v4, 1 }
 0x148   : > { %v378_v9 = vrot.slane %v377_v7, 1  ;;  %v426_v10 = vrot.slane %v425_v5, 1 }
 0x149   : > { %v418_v13 = vadd.f32 %v417_v8, %v416_v53  ;;  %v370_v19 = vadd.f32 %v369_v12, %v368_v4 }
 0x14a   : > { %v379_v14 = vadd.f32 %v378_v9, %v377_v7  ;;  %v427_v15 = vadd.f32 %v426_v10, %v425_v5 }
 0x14b   : > { %v428_v16 = vadd.f32 %v418_v13, %v874_v0  ;;  %v384_v25 = vadd.f32 %v874_v0, %v370_v19 }
 0x14c   : > { %v385_v17 = vadd.f32 %v874_v0, %v379_v14  ;;  %v429_v18 = vadd.f32 %v427_v15, %v874_v0 }
 0x14d   : > { %v440_v20 = vrot.slane %v428_v16, 7 }
 0x14e   : > { %v441_v21 = vrot.slane %v429_v18, 7  ;;  %v432_v22 = vrot.slane %v385_v17, 7 }
 0x14f   : > { %v444_v23 = vsub.f32 %v874_v0, %v440_v20 }
 0x150   : > { %v445_v24 = vsub.f32 %v874_v0, %v441_v21  ;;  %v434_v28 = vsel %vm433_vm2, %v384_v25, %v432_v22 }
 0x151   : > { %v446_v26 = vmul.f32 %v444_v23, %v444_v23  ;;  %v436_v29 = vsub.f32 %v834_v6, %v434_v28 }
 0x152   : > { %v447_v27 = vmul.f32 %v445_v24, %v445_v24 }
 0x153   : > { %450 = vst [vmem:[#allocation1] sm:$0xff] %v446_v26  ;;  %v437_v30 = vmul.f32 %v436_v29, %v436_v29 }
 0x154   : > { %451 = vst [vmem:[#allocation1 + $0x9] sm:$0xff] %v447_v27 }
 0x15b   : > { %v453_v31 = vld [vmem:[#allocation1 + $0x2] ss:$9 sm:$0xff] }
 0x15c   : > { %v455_v0 = vadd.f32 %v453_v31, %v437_v30 }
 0x15e   : > { %460 = vst.msk [vmem:[%s883_s28] ss:$4 sm:$0x3] %vm879_vm1, %v455_v0 }
 0x15f   : > { %691 = shalt.err (!%p688_p3)
}
 0x160   : > { %570 = dma.vmem_to_hbm [thread:$0]  (%p792_p5), %s482_s6, 128, %s484_s7, %s468_s16  }
 0x161 PF: > { %p576_p4 = scmp.ge.s32.totalorder %s726_s15, 2  ;;  %s495_s24 = sand.u32 1, %s714_s12  }
 0x162   : > { %s496_s25 = scalar_lea.sflag [#allocation3], %s495_s24 }
 0x163   : > { %p573_p7 = pnand %p576_p4, %p796_p6 }
 0x165   : > { %p574_p8 = pneg %p573_p7 }
 0x167   : > { %709 = dma.done.wait (%p574_p8), %s496_s25, 128  }
 0x168   : > { %711 = vsyncadd (%p574_p8), %s496_s25, 4294967168  ;;  %p13_p9 = scmp.ge.s32.totalorder %s779_s18, 4   ;;  %s946_s12 = smov %s718_s13 }
 0x169   : > { %s947_s13 = smov %s722_s14  ;;  %s948_s14 = smov %s790_s21 }
 0x16a   : > { %s949_s15 = smov %s779_s18  ;;  %15 = sbr.rel (!%p13_p9) target bundleno = 3 (0x3), region = 70 }
 0x16f   :  { %502 = vsyncpa [#allocation3], 1 }
 0x170   :  { %504 = vsyncpa [#allocation3 + $0x1], 1 }

</bundles_post_ra>
